<compile_context>
chip_gen: v6e
topology: v6e:2x2x1
jax: 0.10.0
libtpu: 0.0.40
codegen_flags: <defaults>
</compile_context>

<pallas_src>
import jax
import jax.numpy as jnp
from jax.experimental import pallas as pl
from jax.experimental.pallas import tpu as pltpu

IMAGENET_MEAN = (0.485, 0.456, 0.406)
IMAGENET_STD = (0.229, 0.224, 0.225)

# Folded affine: ((x*0.25 + 0.5) - mean) / std == x * (0.25/std) + (0.5-mean)/std
_SCALE = tuple(float(0.25 / s) for s in IMAGENET_STD)
_BIAS = tuple(float((0.5 - m) / s) for m, s in zip(IMAGENET_MEAN, IMAGENET_STD))

_LANE = 128


# ----------------------------------------------------------------------------
# Kernels (shape-agnostic: work for both (B_t, C, R, 128) and (B_t, C, L) blocks;
# only Python float scalars are baked in, so nothing is captured as a constant).
# ----------------------------------------------------------------------------
def _rgb_kernel(x_ref, o_ref):
    """Per-channel fused multiply-add; channels unrolled with scalar constants."""
    for c in range(3):
        xc = x_ref[:, c].astype(jnp.float32)
        o_ref[:, c] = (xc * _SCALE[c] + _BIAS[c]).astype(o_ref.dtype)


def _gray_kernel(x_ref, o_ref):
    """Single input plane read once; broadcast to 3 normalized output channels."""
    x = x_ref[:, 0].astype(jnp.float32)
    for c in range(3):
        o_ref[:, c] = (x * _SCALE[c] + _BIAS[c]).astype(o_ref.dtype)


# ----------------------------------------------------------------------------
# Tiling helpers
# ----------------------------------------------------------------------------
def _vmem_limit_bytes():
    """Scoped VMEM limit: half of physical VMEM, capped at 64 MiB.

    -> ~32 MiB on v7x (64 MiB physical), 64 MiB on v5e/v6e (128 MiB physical).
    Falls back conservatively if the query is unavailable (e.g. interpret mode).
    """
    try:
        cap = int(pltpu.get_tpu_info().vmem_capacity_bytes)
    except Exception:
        cap = 64 << 20
    return int(min(cap // 2, 64 << 20))


def _choose_tile(n, rows, c_in, vmem_limit_bytes):
    """Pick (batch_block, row_block, n_batch_blocks, n_row_blocks).

    Per-step tile bytes (fp32 in + fp32 out) = (c_in + 3) * B_t * R * 128 * 4.
    Pallas double-buffers both sides, so resident footprint ~= 2x that; target
    ~75% of the scoped VMEM limit.
    """
    step_budget = (vmem_limit_bytes * 3) // 8          # limit * 0.75 / 2
    bytes_per_row = (c_in + 3) * _LANE * 4
    max_rows = max(8, (step_budget // bytes_per_row) // 8 * 8)

    if rows > max_rows:
        # Large image: tile the row dimension, one image per grid step.
        r_blk, b_t = max_rows, 1
    else:
        # Small image: whole image per step; batch several images per step to
        # amortize the ~0.35 us fixed per-step cost.
        r_blk = rows
        b_t = max(1, min(n, max_rows // max(rows, 1)))
    return b_t, r_blk, pl.cdiv(n, b_t), pl.cdiv(rows, r_blk)


# ----------------------------------------------------------------------------
# Forward
# ----------------------------------------------------------------------------
def ss_modelzoo_encoder_forward(x, out_dtype=jnp.float32):
    """JAX/Pallas equivalent of SSModelZooEncoder.forward preprocessing.

    Args:
      x: float array of shape (N, C, H, W) with C in {1, 3}  (NCHW, like torch).
      out_dtype: output dtype (float32 matches torch; pass bfloat16 if the
        consumer is bf16 to cut output HBM traffic).
    Returns:
      (features, None) where features has shape (N, 3, H, W).
    """
    N, C, H, W = x.shape
    assert C in (1, 3), "input must have 1 or 3 channels"

    L = H * W
    vmem_limit = _vmem_limit_bytes()
    kernel = _rgb_kernel if C == 3 else _gray_kernel

    if L % _LANE == 0:
        # Dense path: trailing (rows, 128) layout, fully lane/sublane dense.
        rows = L // _LANE
        x_in = x.reshape(N, C, rows, _LANE)              # free reshape on NCHW
        b_t, r_blk, n_bblk, n_rblk = _choose_tile(N, rows, C, vmem_limit)
        in_spec = pl.BlockSpec((b_t, C, r_blk, _LANE), lambda n, t: (n, 0, t, 0))
        out_spec = pl.BlockSpec((b_t, 3, r_blk, _LANE), lambda n, t: (n, 0, t, 0))
        out_shape = jax.ShapeDtypeStruct((N, 3, rows, _LANE), out_dtype)
        grid = (n_bblk, n_rblk)
    else:
        # Fallback (rare: H*W not a multiple of 128): sublane-padded (C, L)
        # trailing layout, full extent per image, one image per step.
        x_in = x.reshape(N, C, L)
        in_spec = pl.BlockSpec((1, C, L), lambda n, t: (n, 0, 0))
        out_spec = pl.BlockSpec((1, 3, L), lambda n, t: (n, 0, 0))
        out_shape = jax.ShapeDtypeStruct((N, 3, L), out_dtype)
        grid = (N, 1)

    out = pl.pallas_call(
        kernel,
        out_shape=out_shape,
        grid=grid,
        in_specs=[in_spec],
        out_specs=out_spec,
        compiler_params=pltpu.CompilerParams(
            # Independent output blocks on both axes; v7x can shard across its
            # 2 TensorCores, v5e/v6e (1 TC) unaffected.
            dimension_semantics=("parallel", "parallel"),
            vmem_limit_bytes=vmem_limit,
        ),
    )(x_in)

    # TODO(synk): backbone (self.layers) and self.predict are None in the
    # abstract base class; returning preprocessed features as net_output.
    return out.reshape(N, 3, H, W), None


# ----------------------------------------------------------------------------
# Pure-JAX reference + self-test
# ----------------------------------------------------------------------------
def _reference(x):
    """Pure-JAX reference mirroring the PyTorch forward preprocessing."""
    x = x * 0.25 + 0.5
    if x.shape[1] == 1:
        x = jnp.tile(x, (1, 3, 1, 1))
    mean = jnp.asarray(IMAGENET_MEAN, dtype=jnp.float32).reshape(1, 3, 1, 1)
    std = jnp.asarray(IMAGENET_STD, dtype=jnp.float32).reshape(1, 3, 1, 1)
    return (x - mean) / std


if __name__ == "__main__":
    key = jax.random.PRNGKey(0)
    k1, k2, k3 = jax.random.split(key, 3)

    # RGB input, H*W multiple of 128 -> dense (rows, 128) path.
    x_rgb = jax.random.normal(k1, (2, 3, 16, 16), dtype=jnp.float32)
    out_rgb, aux = ss_modelzoo_encoder_forward(x_rgb)
    out_rgb = jax.block_until_ready(out_rgb)
    assert aux is None
    assert out_rgb.shape == (2, 3, 16, 16)
    assert jnp.allclose(out_rgb, _reference(x_rgb), atol=1e-5, rtol=1e-5)

    # Grayscale input (exercises the repeat(1,3,1,1) branch; single HBM read).
    x_gray = jax.random.normal(k2, (2, 1, 16, 16), dtype=jnp.float32)
    out_gray, _ = ss_modelzoo_encoder_forward(x_gray)
    out_gray = jax.block_until_ready(out_gray)
    assert out_gray.shape == (2, 3, 16, 16)
    assert jnp.allclose(out_gray, _reference(x_gray), atol=1e-5, rtol=1e-5)

    # Ragged spatial size (H*W not a multiple of 128) -> fallback flat path.
    x_odd = jax.random.normal(k3, (2, 3, 10, 10), dtype=jnp.float32)
    out_odd, _ = ss_modelzoo_encoder_forward(x_odd)
    out_odd = jax.block_until_ready(out_odd)
    assert out_odd.shape == (2, 3, 10, 10)
    assert jnp.allclose(out_odd, _reference(x_odd), atol=1e-5, rtol=1e-5)

    print("KERNEL_OK")
</pallas_src>

<mosaic_0001>
module attributes {stable_mosaic.version = 11 : i64} {
  func.func @_rgb_kernel(%arg0: i32, %arg1: i32, %arg2: memref<2x3x2x128xf32, #tpu.memory_space<vmem>>, %arg3: memref<2x3x2x128xf32, #tpu.memory_space<vmem>>) attributes {dimension_semantics = [#tpu.dimension_semantics<parallel>, #tpu.dimension_semantics<parallel>], iteration_bounds = array<i64: 1, 1>, scalar_prefetch = 0 : i64, scratch_operands = 0 : i64, tpu.core_type = #tpu.core_type<tc>, window_params = [{transform_indices = @transform_0, window_bounds = array<i64: 2, 3, 2, 128>}, {transform_indices = @transform_1, window_bounds = array<i64: 2, 3, 2, 128>}]} {
    %c0 = arith.constant 0 : index
    %c0_0 = arith.constant 0 : index
    %c0_1 = arith.constant 0 : index
    %c0_2 = arith.constant 0 : index
    %0 = vector.load %arg2[%c0, %c0_0, %c0_1, %c0_2] : memref<2x3x2x128xf32, #tpu.memory_space<vmem>>, vector<2x1x2x128xf32>
    %1 = vector.shape_cast %0 : vector<2x1x2x128xf32> to vector<2x2x128xf32>
    %cst = arith.constant 1.09170306 : f32
    %2 = vector.broadcast %cst : f32 to vector<2x2x128xf32>
    %3 = arith.mulf %1, %2 : vector<2x2x128xf32>
    %cst_3 = arith.constant 0.0655021816 : f32
    %4 = vector.broadcast %cst_3 : f32 to vector<2x2x128xf32>
    %5 = arith.addf %3, %4 : vector<2x2x128xf32>
    %c0_4 = arith.constant 0 : index
    %c0_5 = arith.constant 0 : index
    %c0_6 = arith.constant 0 : index
    %c0_7 = arith.constant 0 : index
    %6 = vector.load %arg3[%c0_4, %c0_5, %c0_6, %c0_7] : memref<2x3x2x128xf32, #tpu.memory_space<vmem>>, vector<2x1x2x128xf32>
    %7 = vector.shape_cast %6 : vector<2x1x2x128xf32> to vector<2x2x128xf32>
    %8 = vector.shape_cast %5 : vector<2x2x128xf32> to vector<2x1x2x128xf32>
    tpu.vector_store %arg3[%c0_4, %c0_5, %c0_6, %c0_7], %8 {strides = array<i32>} : memref<2x3x2x128xf32, #tpu.memory_space<vmem>>, vector<2x1x2x128xf32>,
    %c0_8 = arith.constant 0 : index
    %c1 = arith.constant 1 : index
    %c0_9 = arith.constant 0 : index
    %c0_10 = arith.constant 0 : index
    %9 = vector.load %arg2[%c0_8, %c1, %c0_9, %c0_10] : memref<2x3x2x128xf32, #tpu.memory_space<vmem>>, vector<2x1x2x128xf32>
    %10 = vector.shape_cast %9 : vector<2x1x2x128xf32> to vector<2x2x128xf32>
    %cst_11 = arith.constant 1.11607146 : f32
    %11 = vector.broadcast %cst_11 : f32 to vector<2x2x128xf32>
    %12 = arith.mulf %10, %11 : vector<2x2x128xf32>
    %cst_12 = arith.constant 0.196428567 : f32
    %13 = vector.broadcast %cst_12 : f32 to vector<2x2x128xf32>
    %14 = arith.addf %12, %13 : vector<2x2x128xf32>
    %c0_13 = arith.constant 0 : index
    %c1_14 = arith.constant 1 : index
    %c0_15 = arith.constant 0 : index
    %c0_16 = arith.constant 0 : index
    %15 = vector.load %arg3[%c0_13, %c1_14, %c0_15, %c0_16] : memref<2x3x2x128xf32, #tpu.memory_space<vmem>>, vector<2x1x2x128xf32>
    %16 = vector.shape_cast %15 : vector<2x1x2x128xf32> to vector<2x2x128xf32>
    %17 = vector.shape_cast %14 : vector<2x2x128xf32> to vector<2x1x2x128xf32>
    tpu.vector_store %arg3[%c0_13, %c1_14, %c0_15, %c0_16], %17 {strides = array<i32>} : memref<2x3x2x128xf32, #tpu.memory_space<vmem>>, vector<2x1x2x128xf32>,
    %c0_17 = arith.constant 0 : index
    %c2 = arith.constant 2 : index
    %c0_18 = arith.constant 0 : index
    %c0_19 = arith.constant 0 : index
    %18 = vector.load %arg2[%c0_17, %c2, %c0_18, %c0_19] : memref<2x3x2x128xf32, #tpu.memory_space<vmem>>, vector<2x1x2x128xf32>
    %19 = vector.shape_cast %18 : vector<2x1x2x128xf32> to vector<2x2x128xf32>
    %cst_20 = arith.constant 1.11111116 : f32
    %20 = vector.broadcast %cst_20 : f32 to vector<2x2x128xf32>
    %21 = arith.mulf %19, %20 : vector<2x2x128xf32>
    %cst_21 = arith.constant 0.417777777 : f32
    %22 = vector.broadcast %cst_21 : f32 to vector<2x2x128xf32>
    %23 = arith.addf %21, %22 : vector<2x2x128xf32>
    %c0_22 = arith.constant 0 : index
    %c2_23 = arith.constant 2 : index
    %c0_24 = arith.constant 0 : index
    %c0_25 = arith.constant 0 : index
    %24 = vector.load %arg3[%c0_22, %c2_23, %c0_24, %c0_25] : memref<2x3x2x128xf32, #tpu.memory_space<vmem>>, vector<2x1x2x128xf32>
    %25 = vector.shape_cast %24 : vector<2x1x2x128xf32> to vector<2x2x128xf32>
    %26 = vector.shape_cast %23 : vector<2x2x128xf32> to vector<2x1x2x128xf32>
    tpu.vector_store %arg3[%c0_22, %c2_23, %c0_24, %c0_25], %26 {strides = array<i32>} : memref<2x3x2x128xf32, #tpu.memory_space<vmem>>, vector<2x1x2x128xf32>,
    return
  }
  func.func @transform_0(%arg0: i32, %arg1: i32) -> (i32, i32, i32, i32) {
    %c0_i32 = arith.constant 0 : i32
    %c0_i32_0 = arith.constant 0 : i32
    %c0_i32_1 = arith.constant 0 : i32
    return %arg0, %c0_i32, %arg1, %c0_i32_0 : i32, i32, i32, i32
  }
  func.func @transform_1(%arg0: i32, %arg1: i32) -> (i32, i32, i32, i32) {
    %c0_i32 = arith.constant 0 : i32
    %c0_i32_0 = arith.constant 0 : i32
    %c0_i32_1 = arith.constant 0 : i32
    return %arg0, %c0_i32, %arg1, %c0_i32_0 : i32, i32, i32, i32
  }
}

</mosaic_0001>

<bundles_post_ra>
// kernel: tpu_custom_call.1
= control target key start
LH: loop header
LB: loop body
LE: loop exit
PB: predicated region body
PF: predicated region fallthrough
CT: control target
= control target key end

     0   :  { %6 = vsyncpa [#allocation3], 0  ;;  %s142_s0 = inlined_call_operand.hbm [shape: f32[2,3,2,128], index: 0, kind: input, shape index: {}]   ;;  %s143_s1 = inlined_call_operand.hbm [shape: f32[2,3,2,128], index: 1, kind: output, shape index: {}]  }
   0x1   :  { %7 = vsyncpa [#allocation4], 0  ;;  %s116_s6 = smov [#allocation2]  }
   0x2   :  { %s13_s7 = sshll.u32 %s116_s6, 4  ;;  %s14_s7 = int_to_ptr.vmem [resolvable:$true] %s13_s7 }
   0x3   :  { %s80_s8 = scalar_lea.vmem %s14_s7, 192  ;;  %p85_p1 = scmp.lt.s32.totalorder %s14_s7, %s14_s7 }
   0x4   :  { %p81_p0 = scmp.ne.s32.totalorder %s14_s7, %s80_s8  ;;  %p86_p2 = scmp.lt.s32.totalorder %s80_s8, %s80_s8 }
   0x6   :  { %p87_p3 = por %p86_p2, %p85_p1 }
   0x8   :  { %p88_p4 = pnand %p87_p3, %p81_p0 }
   0xa   :  { %91 = shalt.err (!%p88_p4)
}
   0xb   :  { %s117_s9 = smov 32   ;;  %s118_s10 = smov 2  }
   0xc   :  { %19 = dma.hbm_to_vmem [thread:$0]  %s142_s0, 192, %s14_s7, [#allocation3], %s117_s9, %s117_s9, %s118_s10  }
   0xd   :  { %112 = dma.done.wait [#allocation3], 192  }
   0xe   :  { %113 = vsyncadd [#allocation3], 4294967104  ;;  %s119_s13 = smov [#allocation5]   ;;  %v23_v0 = vld [vmem:[#allocation2] sm:$0x3] }
   0xf   :  { %s56_s14 = sshll.u32 %s119_s13, 4  ;;  %v24_v1 = vld [vmem:[#allocation2 + $0x6] sm:$0x3]  ;;  %v32_v2 = vld [vmem:[#allocation2 + $0x2] sm:$0x3]  ;;  %s57_s14 = int_to_ptr.vmem [resolvable:$true] %s56_s14 }
  0x10   :  { %v25_v3 = vmul.f32 1.091703, %v23_v0  ;;  %v26_v4 = vmul.f32 1.091703, %v24_v1  ;;  %v34_v5 = vmul.f32 1.1160715, %v32_v2  ;;  %p97_p6 = scmp.lt.s32.totalorder %s57_s14, %s57_s14 }
  0x11   :  { %v33_v6 = vld [vmem:[#allocation2 + $0x8] sm:$0x3]  ;;  %v42_v7 = vld [vmem:[#allocation2 + $0x4] sm:$0x3]  ;;  %v43_v8 = vld [vmem:[#allocation2 + $0xa] sm:$0x3] }
  0x12   :  { %v27_v9 = vadd.f32 0.06550218, %v25_v3  ;;  %v28_v10 = vadd.f32 0.06550218, %v26_v4  ;;  %v36_v11 = vadd.f32 0.19642857, %v34_v5 }
  0x13   :  { %v35_v12 = vmul.f32 1.1160715, %v33_v6  ;;  %v44_v13 = vmul.f32 1.1111112, %v42_v7  ;;  %v45_v14 = vmul.f32 1.1111112, %v43_v8 }
  0x14   :  { %29 = vst [vmem:[#allocation5] sm:$0x3] %v27_v9  ;;  %30 = vst [vmem:[#allocation5 + $0x6] sm:$0x3] %v28_v10  ;;  %s92_s0 = scalar_lea.vmem %s57_s14, 192 }
  0x15   :  { %39 = vst [vmem:[#allocation5 + $0x2] sm:$0x3] %v36_v11  ;;  %v37_v15 = vadd.f32 0.19642857, %v35_v12  ;;  %v46_v16 = vadd.f32 0.41777778, %v44_v13  ;;  %p93_p5 = scmp.ne.s32.totalorder %s57_s14, %s92_s0  ;;  %p98_p7 = scmp.lt.s32.totalorder %s92_s0, %s92_s0 }
  0x16   :  { %v47_v17 = vadd.f32 0.41777778, %v45_v14 }
  0x17   :  { %40 = vst [vmem:[#allocation5 + $0x8] sm:$0x3] %v37_v15  ;;  %49 = vst [vmem:[#allocation5 + $0x4] sm:$0x3] %v46_v16  ;;  %p99_p8 = por %p98_p7, %p97_p6 }
  0x18   :  { %50 = vst [vmem:[#allocation5 + $0xa] sm:$0x3] %v47_v17 }
  0x19   :  { %p100_p9 = pnand %p99_p8, %p93_p5 }
  0x1b   :  { %103 = shalt.err (!%p100_p9)
}
  0x1c   :  { %62 = dma.vmem_to_hbm [thread:$0]  %s57_s14, 192, %s143_s1, [#allocation4], %s117_s9, %s117_s9, %s118_s10  }
  0x1d   :  { %114 = dma.done.wait [#allocation4], 192  }
  0x1e   :  { %115 = vsyncadd [#allocation4], 4294967104 }
  0x1f   :  { %66 = vsyncpa [#allocation3], 1 }
  0x20   :  { %67 = vsyncpa [#allocation4], 1 }

</bundles_post_ra>
